<compile_context>
chip_gen: v5e
topology: v5e:2x2
jax: 0.10.0
libtpu: 0.0.40
codegen_flags: <defaults>
</compile_context>

<pallas_src>
import jax
import jax.numpy as jnp
from jax import lax
from jax.experimental import pallas as pl
from jax.experimental.pallas import tpu as pltpu

# Kernel-width hyperparameters (the torch module stores them in sub-modules;
# here deterministic constants shared by all cells).
A_S = 0.7   # state-kernel width of the KAARMA cells
A_U = 0.7   # input-kernel width of the KAARMA cells
A_T = 2.0   # trajectory-similarity kernel width
# TODO(synk): if cells carry distinct kernel widths, fold per-cell widths into
# the per-cell blocks inside prepare_params instead of these globals.


def _round_up(x, n):
    return ((x + n - 1) // n) * n


# ----------------------------- kernel ---------------------------------------
def mkaarma_seq_kernel(phi_ref, state0_ref, dsbd_ref, segn_ref, ucat_ref,
                       dnorm_ref, abd_ref, wbd_ref, segt_ref, wnorm_ref,
                       sim_ref, nstate_ref, state_sc):
    """One grid step = T_blk timesteps for all C cells (everything 2-D).

    phi_ref    : (T_blk, B, nu)  raw inputs for this time block
    state0_ref : (B, Ps)         initial per-cell states, lane-padded
    dsbd_ref   : (Ps, Mp)        block-diag  -2*a_s*S_c^T
    segn_ref   : (Ps, Mp)        block-ones   a_s  (per-cell ||s_c||^2 seg-sum)
    ucat_ref   : (nu, Mp)        concat      -2*a_u*U_c^T
    dnorm_ref  : (1, Mp)         a_s*||S||^2 + a_u*||U||^2
    abd_ref    : (Mp, Ps)        block-diag   A_c  (zero padding rows/cols)
    wbd_ref    : (Ps, Pt)        block-diag  -2*a_t*W_c^T
    segt_ref   : (Ps, Pt)        block-ones   a_t
    wnorm_ref  : (1, Pt)         a_t*||W||^2
    sim_ref    : (T_blk, B, Pt)  per-step similarities (lane-padded)
    nstate_ref : (T_blk, B, Ps)  per-step new states   (lane-padded)
    state_sc   : (B, Ps)         VMEM carry of the recurrent state
    """
    @pl.when(pl.program_id(0) == 0)
    def _():
        state_sc[...] = state0_ref[...]

    def step(t, s):
        phi = phi_ref[t]                                          # (B, nu)
        phi2 = A_U * jnp.sum(phi * phi, axis=1, keepdims=True)    # (B, 1)

        # fused Gaussian kernel for all cells:
        #   a_s||s_c - S||^2 + a_u||phi - U||^2
        cross_s = jnp.dot(s, dsbd_ref[...], preferred_element_type=jnp.float32)
        s2 = jnp.dot(s * s, segn_ref[...], preferred_element_type=jnp.float32)
        cross_u = jnp.dot(phi, ucat_ref[...], preferred_element_type=jnp.float32)
        d = jnp.maximum(s2 + phi2 + dnorm_ref[...] + cross_s + cross_u, 0.0)
        k = jnp.exp(-d)                                           # (B, Mp)

        # all new states in one block-diagonal matmul; padded lanes stay 0
        new_s = jnp.dot(k, abd_ref[...], preferred_element_type=jnp.float32)
        nstate_ref[t] = new_s.astype(nstate_ref.dtype)

        # trajectory similarity: a_t*||new_s_c - W_{c,t}||^2 (a_t pre-folded)
        ns2 = jnp.dot(new_s * new_s, segt_ref[...],
                      preferred_element_type=jnp.float32)
        cr = jnp.dot(new_s, wbd_ref[...], preferred_element_type=jnp.float32)
        d_t = jnp.maximum(ns2 + cr + wnorm_ref[...], 0.0)
        sim_ref[t] = jnp.exp(-d_t).astype(sim_ref.dtype)
        return new_s

    t_blk = sim_ref.shape[0]
    s_final = lax.fori_loop(0, t_blk, step, state_sc[...], unroll=True)
    state_sc[...] = s_final


# ------------------------- parameter preprocessing ---------------------------
def prepare_params(S_all, U_all, A_all, W_all, a_s=A_S, a_u=A_U, a_t=A_T):
    """Loop-invariant preprocessing, run ONCE per parameter set (hoisted)."""
    f32 = jnp.float32
    C, m, ns = S_all.shape
    nu = U_all.shape[-1]
    nt = W_all.shape[1]
    Mp = _round_up(C * m, 128)     # dictionary lanes
    Ps = _round_up(C * ns, 128)    # state lanes
    Pt = _round_up(C * nt, 128)    # similarity lanes

    dsbd = jnp.zeros((Ps, Mp), f32)
    segn = jnp.zeros((Ps, Mp), f32)
    ucat = jnp.zeros((nu, Mp), f32)
    dnorm = jnp.zeros((1, Mp), f32)
    abd = jnp.zeros((Mp, Ps), f32)
    wbd = jnp.zeros((Ps, Pt), f32)
    segt = jnp.zeros((Ps, Pt), f32)
    wnorm = jnp.zeros((1, Pt), f32)

    for c in range(C):
        rs, ms, ts = c * ns, c * m, c * nt
        S_c = S_all[c].astype(f32)          # (m, ns)
        U_c = U_all[c].astype(f32)          # (m, nu)
        A_c = A_all[c].astype(f32)          # (m, ns)
        W_c = W_all[c].astype(f32)          # (nt, ns)
        dsbd = dsbd.at[rs:rs + ns, ms:ms + m].set(-2.0 * a_s * S_c.T)
        segn = segn.at[rs:rs + ns, ms:ms + m].set(a_s)
        ucat = ucat.at[:, ms:ms + m].set(-2.0 * a_u * U_c.T)
        dnorm = dnorm.at[0, ms:ms + m].set(a_s * jnp.sum(S_c * S_c, -1)
                                           + a_u * jnp.sum(U_c * U_c, -1))
        abd = abd.at[ms:ms + m, rs:rs + ns].set(A_c)   # padded rows stay 0
        wbd = wbd.at[rs:rs + ns, ts:ts + nt].set(-2.0 * a_t * W_c.T)
        segt = segt.at[rs:rs + ns, ts:ts + nt].set(a_t)
        wnorm = wnorm.at[0, ts:ts + nt].set(a_t * jnp.sum(W_c * W_c, -1))

    return dict(dsbd=dsbd, segn=segn, ucat=ucat, dnorm=dnorm, abd=abd,
                wbd=wbd, segt=segt, wnorm=wnorm, dims=(C, m, ns, nu, nt))


# ------------------------------ wrappers -------------------------------------
def mkaarma_sequence(phi_seq, state0_flat, params, t_blk=16):
    """Run the recurrence over a whole sequence inside ONE pallas_call.

    phi_seq     : (T, B, nu)      input features per step
    state0_flat : (B, C*ns)       initial per-cell states (flattened)
    returns       sims (T, B, C*nt), states (T, B, C*ns)
    """
    T, B, nu = phi_seq.shape
    C, m, ns, _, nt = params["dims"]
    dsbd, segn, ucat = params["dsbd"], params["segn"], params["ucat"]
    dnorm, abd = params["dnorm"], params["abd"]
    wbd, segt, wnorm = params["wbd"], params["segt"], params["wnorm"]
    Ps, Mp = dsbd.shape
    Pt = wbd.shape[1]

    t_blk = max(1, min(int(t_blk), T))
    T_pad = _round_up(T, t_blk)
    phi_pad = jnp.pad(phi_seq.astype(jnp.float32),
                      ((0, T_pad - T), (0, 0), (0, 0)))
    state0_pad = jnp.pad(state0_flat.astype(jnp.float32),
                         ((0, 0), (0, Ps - C * ns)))

    c0 = lambda i: (0, 0)   # constant index map -> parameters DMA'd once
    sim_all, nstate_all = pl.pallas_call(
        mkaarma_seq_kernel,
        out_shape=(
            jax.ShapeDtypeStruct((T_pad, B, Pt), jnp.float32),
            jax.ShapeDtypeStruct((T_pad, B, Ps), jnp.float32),
        ),
        grid_spec=pltpu.PrefetchScalarGridSpec(
            num_scalar_prefetch=0,
            grid=(T_pad // t_blk,),
            in_specs=[
                pl.BlockSpec((t_blk, B, nu), lambda i: (i, 0, 0)),  # phi block
                pl.BlockSpec((B, Ps), c0),     # state0
                pl.BlockSpec((Ps, Mp), c0),    # dsbd
                pl.BlockSpec((Ps, Mp), c0),    # segn
                pl.BlockSpec((nu, Mp), c0),    # ucat
                pl.BlockSpec((1, Mp), c0),     # dnorm
                pl.BlockSpec((Mp, Ps), c0),    # abd
                pl.BlockSpec((Ps, Pt), c0),    # wbd
                pl.BlockSpec((Ps, Pt), c0),    # segt
                pl.BlockSpec((1, Pt), c0),     # wnorm
            ],
            out_specs=(
                pl.BlockSpec((t_blk, B, Pt), lambda i: (i, 0, 0)),
                pl.BlockSpec((t_blk, B, Ps), lambda i: (i, 0, 0)),
            ),
            scratch_shapes=[pltpu.VMEM((B, Ps), jnp.float32)],
        ),
        compiler_params=pltpu.CompilerParams(
            dimension_semantics=("arbitrary",)),
    )(phi_pad, state0_pad, dsbd, segn, ucat, dnorm, abd, wbd, segt, wnorm)

    return sim_all[:T, :, :C * nt], nstate_all[:T, :, :C * ns]


def mkaarma_forward(phi, state, S_all, U_all, A_all, W_all):
    """Exact MKAARMACell.forward: one step, shared input state for all cells."""
    C, m, ns = S_all.shape
    B = phi.shape[0]
    params = prepare_params(S_all, U_all, A_all, W_all)
    sims, states = mkaarma_sequence(phi[None], jnp.tile(state, (1, C)),
                                    params, t_blk=1)
    return sims[0], states[0].reshape(B, C, ns)


# ------------------------------ references -----------------------------------
def _sqdist(x, y):
    x2 = jnp.sum(x * x, axis=1, keepdims=True)
    y2 = jnp.sum(y * y, axis=1)[None, :]
    return x2 + y2 - 2.0 * (x @ y.T)


def ref_forward(phi, state, S_all, U_all, A_all, W_all):
    """Pure-JAX mirror of the PyTorch per-cell loop (single step)."""
    C = S_all.shape[0]
    outs, states = [], []
    for c in range(C):
        k = jnp.exp(-A_S * _sqdist(state, S_all[c]) - A_U * _sqdist(phi, U_all[c]))
        new_s = k @ A_all[c]
        states.append(new_s)
        outs.append(jnp.exp(-A_T * _sqdist(new_s, W_all[c])))
    return jnp.concatenate(outs, axis=1), jnp.stack(states, axis=1)


def ref_sequence(phi_seq, state0, S_all, U_all, A_all, W_all):
    """Per-cell recurrence over a sequence (each cell carries its own state)."""
    T = phi_seq.shape[0]
    C = S_all.shape[0]
    s_list = [state0 for _ in range(C)]
    sims, states = [], []
    for t in range(T):
        out_t, st_t = [], []
        for c in range(C):
            k = jnp.exp(-A_S * _sqdist(s_list[c], S_all[c])
                        - A_U * _sqdist(phi_seq[t], U_all[c]))
            new_s = k @ A_all[c]
            s_list[c] = new_s
            st_t.append(new_s)
            out_t.append(jnp.exp(-A_T * _sqdist(new_s, W_all[c])))
        sims.append(jnp.concatenate(out_t, axis=1))
        states.append(jnp.concatenate(st_t, axis=1))
    return jnp.stack(sims), jnp.stack(states)


# --------------------------------- demo --------------------------------------
if __name__ == "__main__":
    B, nu, ns = 8, 8, 32        # batch, input-feature dim, state dim
    C, m, nt = 3, 64, 10        # num cells, dictionary size, similarity_size=10
    T = 32                      # sequence length for the internalized recurrence

    key = jax.random.PRNGKey(0)
    ks = jax.random.split(key, 7)
    phi = jax.random.normal(ks[0], (B, nu), jnp.float32) * 0.5
    state = jax.random.normal(ks[1], (B, ns), jnp.float32) * 0.5
    S_all = jax.random.normal(ks[2], (C, m, ns), jnp.float32) * 0.5
    U_all = jax.random.normal(ks[3], (C, m, nu), jnp.float32) * 0.5
    A_all = jax.random.normal(ks[4], (C, m, ns), jnp.float32) * 0.1
    W_all = jax.random.normal(ks[5], (C, nt, ns), jnp.float32) * 0.5
    phi_seq = jax.random.normal(ks[6], (T, B, nu), jnp.float32) * 0.5

    # --- single step: exact MKAARMACell.forward semantics --------------------
    out, new_state = jax.jit(mkaarma_forward)(phi, state, S_all, U_all, A_all, W_all)
    jax.block_until_ready((out, new_state))
    out_ref, st_ref = ref_forward(phi, state, S_all, U_all, A_all, W_all)
    assert out.shape == (B, C * nt) and new_state.shape == (B, C, ns)
    assert jnp.allclose(out, out_ref, atol=1e-4, rtol=1e-3)
    assert jnp.allclose(new_state, st_ref, atol=1e-4, rtol=1e-3)

    # --- sequence: time recurrence internalized in one kernel launch ---------
    @jax.jit
    def run_seq(phi_seq, state0, S_all, U_all, A_all, W_all):
        params = prepare_params(S_all, U_all, A_all, W_all)
        state0_flat = jnp.tile(state0, (1, S_all.shape[0]))
        return mkaarma_sequence(phi_seq, state0_flat, params, t_blk=16)

    sims, states = run_seq(phi_seq, state, S_all, U_all, A_all, W_all)
    jax.block_until_ready((sims, states))
    sims_ref, states_ref = ref_sequence(phi_seq, state, S_all, U_all, A_all, W_all)
    assert sims.shape == (T, B, C * nt) and states.shape == (T, B, C * ns)
    assert jnp.allclose(sims, sims_ref, atol=1e-4, rtol=1e-3)
    assert jnp.allclose(states, states_ref, atol=1e-4, rtol=1e-3)

    print("KERNEL_OK")
</pallas_src>

<mosaic_0001>
module attributes {stable_mosaic.version = 11 : i64} {
  func.func @mkaarma_seq_kernel(%arg0: i32, %arg1: memref<1x8x8xf32, #tpu.memory_space<vmem>>, %arg2: memref<8x128xf32, #tpu.memory_space<vmem>>, %arg3: memref<128x256xf32, #tpu.memory_space<vmem>>, %arg4: memref<128x256xf32, #tpu.memory_space<vmem>>, %arg5: memref<8x256xf32, #tpu.memory_space<vmem>>, %arg6: memref<1x256xf32, #tpu.memory_space<vmem>>, %arg7: memref<256x128xf32, #tpu.memory_space<vmem>>, %arg8: memref<128x128xf32, #tpu.memory_space<vmem>>, %arg9: memref<128x128xf32, #tpu.memory_space<vmem>>, %arg10: memref<1x128xf32, #tpu.memory_space<vmem>>, %arg11: memref<1x8x128xf32, #tpu.memory_space<vmem>>, %arg12: memref<1x8x128xf32, #tpu.memory_space<vmem>>, %arg13: memref<8x128xf32, #tpu.memory_space<vmem>>) attributes {dimension_semantics = [#tpu.dimension_semantics<arbitrary>], iteration_bounds = array<i64: 1>, scalar_prefetch = 0 : i64, scratch_operands = 1 : i64, tpu.core_type = #tpu.core_type<tc>, window_params = [{transform_indices = @transform_0, window_bounds = array<i64: 1, 8, 8>}, {pipeline_mode = #tpu.pipeline_mode<synchronous>, transform_indices = @transform_1, window_bounds = array<i64: 8, 128>}, {pipeline_mode = #tpu.pipeline_mode<synchronous>, transform_indices = @transform_2, window_bounds = array<i64: 128, 256>}, {pipeline_mode = #tpu.pipeline_mode<synchronous>, transform_indices = @transform_3, window_bounds = array<i64: 128, 256>}, {pipeline_mode = #tpu.pipeline_mode<synchronous>, transform_indices = @transform_4, window_bounds = array<i64: 8, 256>}, {pipeline_mode = #tpu.pipeline_mode<synchronous>, transform_indices = @transform_5, window_bounds = array<i64: 1, 256>}, {pipeline_mode = #tpu.pipeline_mode<synchronous>, transform_indices = @transform_6, window_bounds = array<i64: 256, 128>}, {pipeline_mode = #tpu.pipeline_mode<synchronous>, transform_indices = @transform_7, window_bounds = array<i64: 128, 128>}, {pipeline_mode = #tpu.pipeline_mode<synchronous>, transform_indices = @transform_8, window_bounds = array<i64: 128, 128>}, {pipeline_mode = #tpu.pipeline_mode<synchronous>, transform_indices = @transform_9, window_bounds = array<i64: 1, 128>}, {transform_indices = @transform_10, window_bounds = array<i64: 1, 8, 128>}, {transform_indices = @transform_11, window_bounds = array<i64: 1, 8, 128>}]} {
    %c0_i32 = arith.constant 0 : i32
    %0 = arith.cmpi eq, %arg0, %c0_i32 : i32
    %1 = arith.extui %0 : i1 to i32
    %c0_i32_0 = arith.constant 0 : i32
    %2 = arith.cmpi ne, %1, %c0_i32_0 : i32
    scf.if %2 {
      %c0_38 = arith.constant 0 : index
      %c0_39 = arith.constant 0 : index
      %56 = vector.load %arg2[%c0_38, %c0_39] : memref<8x128xf32, #tpu.memory_space<vmem>>, vector<8x128xf32>
      %c0_40 = arith.constant 0 : index
      %c0_41 = arith.constant 0 : index
      %57 = vector.load %arg13[%c0_40, %c0_41] : memref<8x128xf32, #tpu.memory_space<vmem>>, vector<8x128xf32>
      tpu.vector_store %arg13[%c0_40, %c0_41], %56 {strides = array<i32>} : memref<8x128xf32, #tpu.memory_space<vmem>>, vector<8x128xf32>,
    } else {
    }
    %c0 = arith.constant 0 : index
    %c0_1 = arith.constant 0 : index
    %3 = vector.load %arg13[%c0, %c0_1] : memref<8x128xf32, #tpu.memory_space<vmem>>, vector<8x128xf32>
    %c0_i32_2 = arith.constant 0 : i32
    %4 = arith.index_cast %c0_i32_2 : i32 to index
    %c0_3 = arith.constant 0 : index
    %c0_4 = arith.constant 0 : index
    %5 = vector.load %arg1[%4, %c0_3, %c0_4] : memref<1x8x8xf32, #tpu.memory_space<vmem>>, vector<1x8x8xf32>
    %6 = vector.shape_cast %5 : vector<1x8x8xf32> to vector<8x8xf32>
    %7 = arith.mulf %6, %6 : vector<8x8xf32>
    %cst = arith.constant dense<0.000000e+00> : vector<8xf32>
    %8 = vector.multi_reduction <add>, %7, %cst [1] : vector<8x8xf32> to vector<8xf32>
    %9 = vector.shape_cast %8 : vector<8xf32> to vector<8x1xf32>
    %cst_5 = arith.constant 0.699999988 : f32
    %10 = vector.broadcast %cst_5 : f32 to vector<8x1xf32>
    %11 = arith.mulf %10, %9 : vector<8x1xf32>
    %c0_6 = arith.constant 0 : index
    %c0_7 = arith.constant 0 : index
    %12 = vector.load %arg3[%c0_6, %c0_7] : memref<128x256xf32, #tpu.memory_space<vmem>>, vector<128x256xf32>
    %cst_8 = arith.constant dense<0.000000e+00> : vector<8x256xf32>
    %13 = tpu.matmul %3, %12, %cst_8 {dimension_numbers = #tpu.dot_dimension_numbers<[1], [0], [0], [1], [0, 0, 1, 1], [], []>} : vector<8x128xf32>, vector<128x256xf32>, vector<8x256xf32> -> vector<8x256xf32>
    %14 = arith.mulf %3, %3 : vector<8x128xf32>
    %c0_9 = arith.constant 0 : index
    %c0_10 = arith.constant 0 : index
    %15 = vector.load %arg4[%c0_9, %c0_10] : memref<128x256xf32, #tpu.memory_space<vmem>>, vector<128x256xf32>
    %cst_11 = arith.constant dense<0.000000e+00> : vector<8x256xf32>
    %16 = tpu.matmul %14, %15, %cst_11 {dimension_numbers = #tpu.dot_dimension_numbers<[1], [0], [0], [1], [0, 0, 1, 1], [], []>} : vector<8x128xf32>, vector<128x256xf32>, vector<8x256xf32> -> vector<8x256xf32>
    %c0_12 = arith.constant 0 : index
    %c0_13 = arith.constant 0 : index
    %17 = vector.load %arg5[%c0_12, %c0_13] : memref<8x256xf32, #tpu.memory_space<vmem>>, vector<8x256xf32>
    %cst_14 = arith.constant dense<0.000000e+00> : vector<8x256xf32>
    %18 = tpu.matmul %6, %17, %cst_14 {dimension_numbers = #tpu.dot_dimension_numbers<[1], [0], [0], [1], [0, 0, 1, 1], [], []>} : vector<8x8xf32>, vector<8x256xf32>, vector<8x256xf32> -> vector<8x256xf32>
    %19 = vector.broadcast %11 : vector<8x1xf32> to vector<8x256xf32>
    %20 = arith.addf %16, %19 : vector<8x256xf32>
    %c0_15 = arith.constant 0 : index
    %c0_16 = arith.constant 0 : index
    %21 = vector.load %arg6[%c0_15, %c0_16] : memref<1x256xf32, #tpu.memory_space<vmem>>, vector<1x256xf32>
    %22 = vector.broadcast %21 : vector<1x256xf32> to vector<8x256xf32>
    %23 = arith.addf %20, %22 : vector<8x256xf32>
    %24 = arith.addf %23, %13 : vector<8x256xf32>
    %25 = arith.addf %24, %18 : vector<8x256xf32>
    %cst_17 = arith.constant 0.000000e+00 : f32
    %26 = vector.broadcast %cst_17 : f32 to vector<8x256xf32>
    %27 = arith.maximumf %25, %26 : vector<8x256xf32>
    %cst_18 = arith.constant 0.000000e+00 : f32
    %28 = vector.broadcast %cst_18 : f32 to vector<8x256xf32>
    %29 = arith.subf %28, %27 : vector<8x256xf32>
    %30 = math.exp %29 : vector<8x256xf32>
    %c0_19 = arith.constant 0 : index
    %c0_20 = arith.constant 0 : index
    %31 = vector.load %arg7[%c0_19, %c0_20] : memref<256x128xf32, #tpu.memory_space<vmem>>, vector<256x128xf32>
    %cst_21 = arith.constant dense<0.000000e+00> : vector<8x128xf32>
    %32 = tpu.matmul %30, %31, %cst_21 {dimension_numbers = #tpu.dot_dimension_numbers<[1], [0], [0], [1], [0, 0, 1, 1], [], []>} : vector<8x256xf32>, vector<256x128xf32>, vector<8x128xf32> -> vector<8x128xf32>
    %33 = arith.index_cast %c0_i32_2 : i32 to index
    %c0_22 = arith.constant 0 : index
    %c0_23 = arith.constant 0 : index
    %34 = vector.load %arg12[%33, %c0_22, %c0_23] : memref<1x8x128xf32, #tpu.memory_space<vmem>>, vector<1x8x128xf32>
    %35 = vector.shape_cast %34 : vector<1x8x128xf32> to vector<8x128xf32>
    %36 = vector.shape_cast %32 : vector<8x128xf32> to vector<1x8x128xf32>
    tpu.vector_store %arg12[%33, %c0_22, %c0_23], %36 {strides = array<i32>} : memref<1x8x128xf32, #tpu.memory_space<vmem>>, vector<1x8x128xf32>,
    %37 = arith.mulf %32, %32 : vector<8x128xf32>
    %c0_24 = arith.constant 0 : index
    %c0_25 = arith.constant 0 : index
    %38 = vector.load %arg9[%c0_24, %c0_25] : memref<128x128xf32, #tpu.memory_space<vmem>>, vector<128x128xf32>
    %cst_26 = arith.constant dense<0.000000e+00> : vector<8x128xf32>
    %39 = tpu.matmul %37, %38, %cst_26 {dimension_numbers = #tpu.dot_dimension_numbers<[1], [0], [0], [1], [0, 0, 1, 1], [], []>} : vector<8x128xf32>, vector<128x128xf32>, vector<8x128xf32> -> vector<8x128xf32>
    %c0_27 = arith.constant 0 : index
    %c0_28 = arith.constant 0 : index
    %40 = vector.load %arg8[%c0_27, %c0_28] : memref<128x128xf32, #tpu.memory_space<vmem>>, vector<128x128xf32>
    %cst_29 = arith.constant dense<0.000000e+00> : vector<8x128xf32>
    %41 = tpu.matmul %32, %40, %cst_29 {dimension_numbers = #tpu.dot_dimension_numbers<[1], [0], [0], [1], [0, 0, 1, 1], [], []>} : vector<8x128xf32>, vector<128x128xf32>, vector<8x128xf32> -> vector<8x128xf32>
    %42 = arith.addf %39, %41 : vector<8x128xf32>
    %c0_30 = arith.constant 0 : index
    %c0_31 = arith.constant 0 : index
    %43 = vector.load %arg10[%c0_30, %c0_31] : memref<1x128xf32, #tpu.memory_space<vmem>>, vector<1x128xf32>
    %44 = vector.broadcast %43 : vector<1x128xf32> to vector<8x128xf32>
    %45 = arith.addf %42, %44 : vector<8x128xf32>
    %cst_32 = arith.constant 0.000000e+00 : f32
    %46 = vector.broadcast %cst_32 : f32 to vector<8x128xf32>
    %47 = arith.maximumf %45, %46 : vector<8x128xf32>
    %cst_33 = arith.constant 0.000000e+00 : f32
    %48 = vector.broadcast %cst_33 : f32 to vector<8x128xf32>
    %49 = arith.subf %48, %47 : vector<8x128xf32>
    %50 = math.exp %49 : vector<8x128xf32>
    %51 = arith.index_cast %c0_i32_2 : i32 to index
    %c0_34 = arith.constant 0 : index
    %c0_35 = arith.constant 0 : index
    %52 = vector.load %arg11[%51, %c0_34, %c0_35] : memref<1x8x128xf32, #tpu.memory_space<vmem>>, vector<1x8x128xf32>
    %53 = vector.shape_cast %52 : vector<1x8x128xf32> to vector<8x128xf32>
    %54 = vector.shape_cast %50 : vector<8x128xf32> to vector<1x8x128xf32>
    tpu.vector_store %arg11[%51, %c0_34, %c0_35], %54 {strides = array<i32>} : memref<1x8x128xf32, #tpu.memory_space<vmem>>, vector<1x8x128xf32>,
    %c1_i32 = arith.constant 1 : i32
    %c0_36 = arith.constant 0 : index
    %c0_37 = arith.constant 0 : index
    %55 = vector.load %arg13[%c0_36, %c0_37] : memref<8x128xf32, #tpu.memory_space<vmem>>, vector<8x128xf32>
    tpu.vector_store %arg13[%c0_36, %c0_37], %32 {strides = array<i32>} : memref<8x128xf32, #tpu.memory_space<vmem>>, vector<8x128xf32>,
    return
  }
  func.func @transform_0(%arg0: i32) -> (i32, i32, i32) {
    %c0_i32 = arith.constant 0 : i32
    %c0_i32_0 = arith.constant 0 : i32
    %c0_i32_1 = arith.constant 0 : i32
    return %arg0, %c0_i32, %c0_i32_0 : i32, i32, i32
  }
  func.func @transform_1(%arg0: i32) -> (i32, i32) {
    %c0_i32 = arith.constant 0 : i32
    %c0_i32_0 = arith.constant 0 : i32
    %c0_i32_1 = arith.constant 0 : i32
    return %c0_i32, %c0_i32_0 : i32, i32
  }
  func.func @transform_2(%arg0: i32) -> (i32, i32) {
    %c0_i32 = arith.constant 0 : i32
    %c0_i32_0 = arith.constant 0 : i32
    %c0_i32_1 = arith.constant 0 : i32
    return %c0_i32, %c0_i32_0 : i32, i32
  }
  func.func @transform_3(%arg0: i32) -> (i32, i32) {
    %c0_i32 = arith.constant 0 : i32
    %c0_i32_0 = arith.constant 0 : i32
    %c0_i32_1 = arith.constant 0 : i32
    return %c0_i32, %c0_i32_0 : i32, i32
  }
  func.func @transform_4(%arg0: i32) -> (i32, i32) {
    %c0_i32 = arith.constant 0 : i32
    %c0_i32_0 = arith.constant 0 : i32
    %c0_i32_1 = arith.constant 0 : i32
    return %c0_i32, %c0_i32_0 : i32, i32
  }
  func.func @transform_5(%arg0: i32) -> (i32, i32) {
    %c0_i32 = arith.constant 0 : i32
    %c0_i32_0 = arith.constant 0 : i32
    %c0_i32_1 = arith.constant 0 : i32
    return %c0_i32, %c0_i32_0 : i32, i32
  }
  func.func @transform_6(%arg0: i32) -> (i32, i32) {
    %c0_i32 = arith.constant 0 : i32
    %c0_i32_0 = arith.constant 0 : i32
    %c0_i32_1 = arith.constant 0 : i32
    return %c0_i32, %c0_i32_0 : i32, i32
  }
  func.func @transform_7(%arg0: i32) -> (i32, i32) {
    %c0_i32 = arith.constant 0 : i32
    %c0_i32_0 = arith.constant 0 : i32
    %c0_i32_1 = arith.constant 0 : i32
    return %c0_i32, %c0_i32_0 : i32, i32
  }
  func.func @transform_8(%arg0: i32) -> (i32, i32) {
    %c0_i32 = arith.constant 0 : i32
    %c0_i32_0 = arith.constant 0 : i32
    %c0_i32_1 = arith.constant 0 : i32
    return %c0_i32, %c0_i32_0 : i32, i32
  }
  func.func @transform_9(%arg0: i32) -> (i32, i32) {
    %c0_i32 = arith.constant 0 : i32
    %c0_i32_0 = arith.constant 0 : i32
    %c0_i32_1 = arith.constant 0 : i32
    return %c0_i32, %c0_i32_0 : i32, i32
  }
  func.func @transform_10(%arg0: i32) -> (i32, i32, i32) {
    %c0_i32 = arith.constant 0 : i32
    %c0_i32_0 = arith.constant 0 : i32
    %c0_i32_1 = arith.constant 0 : i32
    return %arg0, %c0_i32, %c0_i32_0 : i32, i32, i32
  }
  func.func @transform_11(%arg0: i32) -> (i32, i32, i32) {
    %c0_i32 = arith.constant 0 : i32
    %c0_i32_0 = arith.constant 0 : i32
    %c0_i32_1 = arith.constant 0 : i32
    return %arg0, %c0_i32, %c0_i32_0 : i32, i32, i32
  }
}

</mosaic_0001>

<bundles_post_ra>
// kernel: tile.9
= control target key start
LH: loop header
LB: loop body
LE: loop exit
PB: predicated region body
PF: predicated region fallthrough
CT: control target
= control target key end

     0   :  { %vm36_vm0 = vcmask 1047556   ;;  %vm38_vm1 = vcmask 261120   ;;  %s70_s24 = smov 32   ;;  %vm48_vm2 = vcmask 785920   ;;  %vm58_vm3 = vcmask 523520   ;;  %s114_s0 = inlined_call_operand.vmem [shape: f32[8,3,32], index: 0, kind: input, shape index: {}]   ;;  %s115_s1 = inlined_call_operand.vmem [shape: f32[8,96], index: 1, kind: output, shape index: {}]  }
   0x1   :  { %v60_v0 = vld [vmem:[%s114_s0 + $0x1c] sm:$0xf]  ;;  %v61_v1 = vld [vmem:[%s114_s0 + $0x18] sm:$0xf]  ;;  %v62_v2 = vld [vmem:[%s114_s0 + $0x14] sm:$0xf] }
   0x2   :  { %7 = vst [vmem:[#allocation0 + $0x38] sm:$0xf] %v60_v0  ;;  %v63_v3 = vld [vmem:[%s114_s0 + $0x10] sm:$0xf]  ;;  %v64_v4 = vld [vmem:[%s114_s0 + $0xc] sm:$0xf] }
   0x3   :  { %11 = vst [vmem:[#allocation0 + $0x30] sm:$0xf] %v61_v1  ;;  %v65_v5 = vld [vmem:[%s114_s0 + $0x8] sm:$0xf]  ;;  %v66_v6 = vld [vmem:[%s114_s0 + $0x4] sm:$0xf] }
   0x4   :  { %15 = vst [vmem:[#allocation0 + $0x28] sm:$0xf] %v62_v2  ;;  %v32_v7 = vld [vmem:[%s114_s0] sm:$0xf]  ;;  %s69_s0 = smov 64  }
   0x5   :  { %19 = vst [vmem:[#allocation0 + $0x20] sm:$0xf] %v63_v3 }
   0x6   :  { %23 = vst [vmem:[#allocation0 + $0x18] sm:$0xf] %v64_v4 }
   0x7   :  { %27 = vst [vmem:[#allocation0 + $0x10] sm:$0xf] %v65_v5 }
   0x8   :  { %31 = vst [vmem:[#allocation0 + $0x8] sm:$0xf] %v66_v6 }
   0x9   :  { %33 = vst [vmem:[#allocation0] sm:$0xf] %v32_v7 }
   0xc   :  { %v43_v8 = vld [vmem:[#allocation0 + $0x2] ss:$8 sm:$0xf0]   ;;  %v35_v9 = vld [vmem:[#allocation0] ss:$8 sm:$0xf0]  }
   0xd   :  { %v53_v15 = vld [vmem:[#allocation0 + $0x1] ss:$8 sm:$0xf0]  }
  0x10   :  { %v34_v10 = vld [vmem:[#allocation0] ss:$8 sm:$0xf]   ;;  %v41_v11 = vld [vmem:[#allocation0 + $0x2] ss:$8 sm:$0xf]  }
  0x11   :  { %v45_v12 = vsel %vm36_vm0, %v43_v8, %v41_v11  ;;  %v37_v13 = vsel %vm36_vm0, %v35_v9, %v34_v10  ;;  %v51_v14 = vld [vmem:[#allocation0 + $0x1] ss:$8 sm:$0xf]  }
  0x12   :  { %46 = vrot.lane.b32.xlu0 %v45_v12, %s69_s0  ;;  %39 = vst.msk [vmem:[%s115_s1] sm:$0xff] %vm38_vm1, %v37_v13   ;;  %v55_v16 = vsel %vm36_vm0, %v53_v15, %v51_v14 }
  0x1a   :  { %56 = vrot.lane.b32.xlu0 %v55_v16, %s70_s24 }
  0x84   :  { %v47_v17 = vpop.permute.xlu0 %46  }
  0x85   :  { %49 = vst.msk [vmem:[%s115_s1] sm:$0xff] %vm48_vm2, %v47_v17  }
  0x8c   :  { %v57_v18 = vpop.permute.xlu0 %56  }
  0x8d   :  { %59 = vst.msk [vmem:[%s115_s1] sm:$0xff] %vm58_vm3, %v57_v18  }

// kernel: squeeze.27
= control target key start
LH: loop header
LB: loop body
LE: loop exit
PB: predicated region body
PF: predicated region fallthrough
CT: control target
= control target key end

     0   :  { %s80_s8 = smov 64   ;;  %vm3_vm0 = vcmask 261120   ;;  %s118_s0 = inlined_call_operand.vmem [shape: f32[1,8,96], index: 0, kind: input, shape index: {}]   ;;  %s119_s1 = inlined_call_operand.vmem [shape: f32[8,3,32], index: 1, kind: output, shape index: {}]  }
   0x1   :  { %v6_v0 = vld [vmem:[%s118_s0] sm:$0xff]   ;;  %s79_s0 = smov 96  }
   0x2   :  { %7 = vrot.lane.b32.xlu0 %v6_v0, %s79_s0  ;;  %4 = vst.msk [vmem:[#allocation0] ss:$8 sm:$0xf] %vm3_vm0, %v6_v0  }
   0x3   :  { %5 = vst.msk [vmem:[#allocation0] ss:$8 sm:$0xf0] %vm3_vm0, %v6_v0  }
   0xa   :  { %15 = vrot.lane.b32.xlu0 %v6_v0, %s80_s8 }
  0x74   :  { %v8_v1 = vpop.permute.xlu0 %7  }
  0x75   :  { %11 = vst.msk [vmem:[#allocation0 + $0x1] ss:$8 sm:$0xf] %vm3_vm0, %v8_v1  }
  0x76   :  { %13 = vst.msk [vmem:[#allocation0 + $0x1] ss:$8 sm:$0xf0] %vm3_vm0, %v8_v1  }
  0x7c   :  { %v16_v2 = vpop.permute.xlu0 %15  }
  0x7d   :  { %19 = vst.msk [vmem:[#allocation0 + $0x2] ss:$8 sm:$0xf] %vm3_vm0, %v16_v2  }
  0x7e   :  { %21 = vst.msk [vmem:[#allocation0 + $0x2] ss:$8 sm:$0xf0] %vm3_vm0, %v16_v2  }
  0x84   :  { %v24_v3 = vld [vmem:[#allocation0] sm:$0xf]  ;;  %v29_v4 = vld [vmem:[#allocation0 + $0x8] sm:$0xf]  ;;  %v35_v5 = vld [vmem:[#allocation0 + $0x10] sm:$0xf] }
  0x85   :  { %27 = vst [vmem:[%s119_s1] sm:$0xf] %v24_v3  ;;  %v41_v6 = vld [vmem:[#allocation0 + $0x18] sm:$0xf]  ;;  %v47_v7 = vld [vmem:[#allocation0 + $0x20] sm:$0xf] }
  0x86   :  { %70 = vst [vmem:[%s119_s1 + $0x4] sm:$0xf] %v29_v4  ;;  %v53_v8 = vld [vmem:[#allocation0 + $0x28] sm:$0xf]  ;;  %v59_v9 = vld [vmem:[#allocation0 + $0x30] sm:$0xf] }
  0x87   :  { %71 = vst [vmem:[%s119_s1 + $0x8] sm:$0xf] %v35_v5  ;;  %v65_v10 = vld [vmem:[#allocation0 + $0x38] sm:$0xf] }
  0x88   :  { %72 = vst [vmem:[%s119_s1 + $0xc] sm:$0xf] %v41_v6 }
  0x89   :  { %73 = vst [vmem:[%s119_s1 + $0x10] sm:$0xf] %v47_v7 }
  0x8a   :  { %74 = vst [vmem:[%s119_s1 + $0x14] sm:$0xf] %v53_v8 }
  0x8b   :  { %75 = vst [vmem:[%s119_s1 + $0x18] sm:$0xf] %v59_v9 }
  0x8c   :  { %76 = vst [vmem:[%s119_s1 + $0x1c] sm:$0xf] %v65_v10 }

// kernel: mkaarma_forward.1
= control target key start
LH: loop header
LB: loop body
LE: loop exit
PB: predicated region body
PF: predicated region fallthrough
CT: control target
= control target key end

     0   :  { %vm46_vm0 = vcmask 64512   ;;  %s906_s4 = inlined_call_operand.vmem [shape: f32[8,256], index: 4, kind: input, shape index: {}]   ;;  %s907_s3 = inlined_call_operand.vmem [shape: f32[128,256], index: 3, kind: input, shape index: {}]   ;;  %s908_s2 = inlined_call_operand.vmem [shape: f32[128,256], index: 2, kind: input, shape index: {}]   ;;  %s909_s0 = inlined_call_operand.vmem [shape: f32[1,8,8], index: 0, kind: input, shape index: {}]   ;;  %s910_s1 = inlined_call_operand.vmem [shape: f32[8,128], index: 1, kind: input, shape index: {}]   ;;  %s911_s6 = inlined_call_operand.vmem [shape: f32[256,128], index: 6, kind: input, shape index: {}]   ;;  %s912_s7 = inlined_call_operand.vmem [shape: f32[128,128], index: 7, kind: input, shape index: {}]   ;;  %s913_s8 = inlined_call_operand.vmem [shape: f32[128,128], index: 8, kind: input, shape index: {}]   ;;  %s914_s5 = inlined_call_operand.vmem [shape: f32[1,256], index: 5, kind: input, shape index: {}]   ;;  %s915_s11 = inlined_call_operand.vmem [shape: f32[1,8,128], index: 11, kind: output, shape index: {1}]   ;;  %s916_s9 = inlined_call_operand.vmem [shape: f32[1,128], index: 9, kind: input, shape index: {}]   ;;  %s917_s10 = inlined_call_operand.vmem [shape: f32[1,8,128], index: 10, kind: output, shape index: {0}]  }
   0x1   :  { %v156_v0 = vld [vmem:[%s906_s4] sm:$0xff]  ;;  %v157_v1 = vld [vmem:[%s906_s4 + $0x8] sm:$0xff]  ;;  %v154_v2 = vld [vmem:[%s907_s3 + $0xf0] sm:$0xff] }
   0x2   :  { %176 = vmatpush.msra.mxu2 %v156_v0  ;;  %196 = vmatpush.msra.mxu3 %v157_v1  ;;  %v155_v3 = vld [vmem:[%s907_s3 + $0xf8] sm:$0xff]  ;;  %v152_v4 = vld [vmem:[%s907_s3 + $0xe0] sm:$0xff]  ;;  %v153_v5 = vld [vmem:[%s907_s3 + $0xe8] sm:$0xff] }
   0x3   :  { %v150_v6 = vld [vmem:[%s907_s3 + $0xd0] sm:$0xff]  ;;  %v151_v7 = vld [vmem:[%s907_s3 + $0xd8] sm:$0xff]  ;;  %v148_v8 = vld [vmem:[%s907_s3 + $0xc0] sm:$0xff] }
   0x4   :  { %201 = vmatpush.msrb.mxu2 %v154_v2  ;;  %221 = vmatpush.msrb.mxu3 %v155_v3  ;;  %v81_v9 = vld [vmem:[%s908_s2 + $0xf0] sm:$0xff]  ;;  %v82_v10 = vld [vmem:[%s908_s2 + $0xf8] sm:$0xff]  ;;  %v149_v11 = vld [vmem:[%s907_s3 + $0xc8] sm:$0xff] }
   0x5   :  { %83 = vmatpush.msra.mxu0 %v81_v9  ;;  %103 = vmatpush.msra.mxu1 %v82_v10  ;;  %v79_v12 = vld [vmem:[%s908_s2 + $0xe0] sm:$0xff]  ;;  %v80_v13 = vld [vmem:[%s908_s2 + $0xe8] sm:$0xff]  ;;  %v77_v14 = vld [vmem:[%s908_s2 + $0xd0] sm:$0xff] }
   0x6   :  { %202 = vmatpush.msrb.mxu2 %v152_v4  ;;  %222 = vmatpush.msrb.mxu3 %v153_v5  ;;  %v146_v15 = vld [vmem:[%s907_s3 + $0xb0] sm:$0xff]  ;;  %v147_v16 = vld [vmem:[%s907_s3 + $0xb8] sm:$0xff]  ;;  %v75_v18 = vld [vmem:[%s908_s2 + $0xc0] sm:$0xff] }
   0x7   :  { %84 = vmatpush.msra.mxu0 %v79_v12  ;;  %104 = vmatpush.msra.mxu1 %v80_v13  ;;  %v78_v17 = vld [vmem:[%s908_s2 + $0xd8] sm:$0xff]  ;;  %v76_v19 = vld [vmem:[%s908_s2 + $0xc8] sm:$0xff]  ;;  %v144_v20 = vld [vmem:[%s907_s3 + $0xa0] sm:$0xff] }
   0x8   :  { %203 = vmatpush.msrb.mxu2 %v150_v6  ;;  %223 = vmatpush.msrb.mxu3 %v151_v7  ;;  %v145_v21 = vld [vmem:[%s907_s3 + $0xa8] sm:$0xff]  ;;  %v73_v22 = vld [vmem:[%s908_s2 + $0xb0] sm:$0xff]  ;;  %v74_v23 = vld [vmem:[%s908_s2 + $0xb8] sm:$0xff] }
   0x9   :  { %85 = vmatpush.msra.mxu0 %v77_v14  ;;  %105 = vmatpush.msra.mxu1 %v78_v17  ;;  %v142_v24 = vld [vmem:[%s907_s3 + $0x90] sm:$0xff]  ;;  %v143_v25 = vld [vmem:[%s907_s3 + $0x98] sm:$0xff]  ;;  %v71_v26 = vld [vmem:[%s908_s2 + $0xa0] sm:$0xff] }
   0xa   :  { %204 = vmatpush.msrb.mxu2 %v148_v8  ;;  %224 = vmatpush.msrb.mxu3 %v149_v11  ;;  %v72_v27 = vld [vmem:[%s908_s2 + $0xa8] sm:$0xff]  ;;  %v140_v28 = vld [vmem:[%s907_s3 + $0x80] sm:$0xff]  ;;  %v69_v30 = vld [vmem:[%s908_s2 + $0x90] sm:$0xff] }
   0xb   :  { %86 = vmatpush.msra.mxu0 %v75_v18  ;;  %106 = vmatpush.msra.mxu1 %v76_v19  ;;  %v141_v29 = vld [vmem:[%s907_s3 + $0x88] sm:$0xff]  ;;  %v70_v31 = vld [vmem:[%s908_s2 + $0x98] sm:$0xff]  ;;  %v138_v32 = vld [vmem:[%s907_s3 + $0x70] sm:$0xff] }
   0xc   :  { %205 = vmatpush.msrb.mxu2 %v146_v15  ;;  %225 = vmatpush.msrb.mxu3 %v147_v16  ;;  %v139_v33 = vld [vmem:[%s907_s3 + $0x78] sm:$0xff]  ;;  %v44_v34 = vld [vmem:[%s909_s0] sm:$0xff]  ;;  %v137_v36 = vld [vmem:[%s907_s3 + $0x68] sm:$0xff] }
   0xd   :  { %87 = vmatpush.msra.mxu0 %v73_v22  ;;  %107 = vmatpush.msra.mxu1 %v74_v23  ;;  %v136_v35 = vld [vmem:[%s907_s3 + $0x60] sm:$0xff]  ;;  %v68_v38 = vld [vmem:[%s908_s2 + $0x88] sm:$0xff]  ;;  %v134_v39 = vld [vmem:[%s907_s3 + $0x50] sm:$0xff]  ;;  %v45_v60 = vmul.f32 %v44_v34, %v44_v34 }
   0xe   :  { %206 = vmatpush.msrb.mxu2 %v144_v20  ;;  %226 = vmatpush.msrb.mxu3 %v145_v21  ;;  %v67_v37 = vld [vmem:[%s908_s2 + $0x80] sm:$0xff]  ;;  %v135_v40 = vld [vmem:[%s907_s3 + $0x58] sm:$0xff]  ;;  %v65_v41 = vld [vmem:[%s908_s2 + $0x70] sm:$0xff] }
   0xf   :  { %88 = vmatpush.msra.mxu0 %v71_v26  ;;  %108 = vmatpush.msra.mxu1 %v72_v27  ;;  %v66_v42 = vld [vmem:[%s908_s2 + $0x78] sm:$0xff]  ;;  %v132_v43 = vld [vmem:[%s907_s3 + $0x40] sm:$0xff]  ;;  %v133_v44 = vld [vmem:[%s907_s3 + $0x48] sm:$0xff]  ;;  %v47_v2 = vsel %vm46_vm0, %v45_v60, 0.0 }
  0x10   :  { %207 = vmatpush.msrb.mxu2 %v142_v24  ;;  %227 = vmatpush.msrb.mxu3 %v143_v25  ;;  %v63_v45 = vld [vmem:[%s908_s2 + $0x60] sm:$0xff]  ;;  %v64_v46 = vld [vmem:[%s908_s2 + $0x68] sm:$0xff]  ;;  %v130_v47 = vld [vmem:[%s907_s3 + $0x30] sm:$0xff] }
  0x11   :  { %89 = vmatpush.msra.mxu0 %v69_v30  ;;  %109 = vmatpush.msra.mxu1 %v70_v31  ;;  %v131_v48 = vld [vmem:[%s907_s3 + $0x38] sm:$0xff]  ;;  %v61_v49 = vld [vmem:[%s908_s2 + $0x50] sm:$0xff]  ;;  %v128_v51 = vld [vmem:[%s907_s3 + $0x20] sm:$0xff] }
  0x12   :  { %208 = vmatpush.msrb.mxu2 %v140_v28  ;;  %228 = vmatpush.msrb.mxu3 %v141_v29  ;;  %v62_v50 = vld [vmem:[%s908_s2 + $0x58] sm:$0xff]  ;;  %v129_v52 = vld [vmem:[%s907_s3 + $0x28] sm:$0xff]  ;;  %v41_v53 = vld [vmem:[%s910_s1] sm:$0xff] }
  0x13   :  { %426 = vmatmul.msk.f32.vlgmr.msra.gmra.mxu2 %vm46_vm0, %v44_v34  ;;  %427 = vmatmul.msk.f32.vlgmr.msra.gmra.mxu3 %vm46_vm0, %v44_v34  ;;  %v59_v54 = vld [vmem:[%s908_s2 + $0x40] sm:$0xff]  ;;  %v60_v55 = vld [vmem:[%s908_s2 + $0x48] sm:$0xff]  ;;  %v126_v56 = vld [vmem:[%s907_s3 + $0x10] sm:$0xff]  ;;  %v123_v63 = vmul.f32 %v41_v53, %v41_v53 }
  0x14   :  { %209 = vmatpush.msrb.mxu2 %v138_v32  ;;  %229 = vmatpush.msrb.mxu3 %v139_v33  ;;  %v127_v57 = vld [vmem:[%s907_s3 + $0x18] sm:$0xff]  ;;  %v57_v58 = vld [vmem:[%s908_s2 + $0x30] sm:$0xff]  ;;  %v124_v61 = vld [vmem:[%s907_s3] sm:$0xff] }
  0x15   :  { %90 = vmatpush.msra.mxu0 %v67_v37  ;;  %110 = vmatpush.msra.mxu1 %v68_v38  ;;  %v58_v59 = vld [vmem:[%s908_s2 + $0x38] sm:$0xff]  ;;  %v125_v62 = vld [vmem:[%s907_s3 + $0x8] sm:$0xff]  ;;  %v55_v0 = vld [vmem:[%s908_s2 + $0x20] sm:$0xff] }
  0x16   :  { %210 = vmatpush.msrb.mxu2 %v136_v35  ;;  %230 = vmatpush.msrb.mxu3 %v137_v36  ;;  %v56_v1 = vld [vmem:[%s908_s2 + $0x28] sm:$0xff]  ;;  %v53_v3 = vld [vmem:[%s908_s2 + $0x10] sm:$0xff]  ;;  %v54_v4 = vld [vmem:[%s908_s2 + $0x18] sm:$0xff] }
  0x17   :  { %91 = vmatpush.msra.mxu0 %v65_v41  ;;  %111 = vmatpush.msra.mxu1 %v66_v42  ;;  %v51_v5 = vld [vmem:[%s908_s2] sm:$0xff]  ;;  %v52_v6 = vld [vmem:[%s908_s2 + $0x8] sm:$0xff]  ;;  %v276_v7 = vld [vmem:[%s911_s6 + $0x78] sm:$0xff] }
  0x18   :  { %211 = vmatpush.msrb.mxu2 %v134_v39  ;;  %231 = vmatpush.msrb.mxu3 %v135_v40  ;;  %v292_v8 = vld [vmem:[%s911_s6 + $0xf8] sm:$0xff]  ;;  %v275_v9 = vld [vmem:[%s911_s6 + $0x70] sm:$0xff]  ;;  %v274_v11 = vld [vmem:[%s911_s6 + $0x68] sm:$0xff] }
  0x19   :  { %92 = vmatpush.msra.mxu0 %v63_v45  ;;  %112 = vmatpush.msra.mxu1 %v64_v46  ;;  %v291_v10 = vld [vmem:[%s911_s6 + $0xf0] sm:$0xff]  ;;  %v290_v12 = vld [vmem:[%s911_s6 + $0xe8] sm:$0xff]  ;;  %v273_v13 = vld [vmem:[%s911_s6 + $0x60] sm:$0xff] }
  0x1a   :  { %212 = vmatpush.msrb.mxu2 %v132_v43  ;;  %232 = vmatpush.msrb.mxu3 %v133_v44  ;;  %v289_v14 = vld [vmem:[%s911_s6 + $0xe0] sm:$0xff]  ;;  %v272_v15 = vld [vmem:[%s911_s6 + $0x58] sm:$0xff]  ;;  %v271_v17 = vld [vmem:[%s911_s6 + $0x50] sm:$0xff] }
  0x1b   :  { %93 = vmatpush.msra.mxu0 %v61_v49  ;;  %113 = vmatpush.msra.mxu1 %v62_v50  ;;  %v288_v16 = vld [vmem:[%s911_s6 + $0xd8] sm:$0xff]  ;;  %v287_v18 = vld [vmem:[%s911_s6 + $0xd0] sm:$0xff]  ;;  %v270_v19 = vld [vmem:[%s911_s6 + $0x48] sm:$0xff] }
  0x1c   :  { %213 = vmatpush.msrb.mxu2 %v130_v47  ;;  %233 = vmatpush.msrb.mxu3 %v131_v48  ;;  %v286_v20 = vld [vmem:[%s911_s6 + $0xc8] sm:$0xff]  ;;  %v269_v21 = vld [vmem:[%s911_s6 + $0x40] sm:$0xff]  ;;  %v268_v23 = vld [vmem:[%s911_s6 + $0x38] sm:$0xff] }
  0x1d   :  { %94 = vmatpush.msra.mxu0 %v59_v54  ;;  %114 = vmatpush.msra.mxu1 %v60_v55  ;;  %v285_v22 = vld [vmem:[%s911_s6 + $0xc0] sm:$0xff]  ;;  %v284_v24 = vld [vmem:[%s911_s6 + $0xb8] sm:$0xff]  ;;  %v267_v25 = vld [vmem:[%s911_s6 + $0x30] sm:$0xff] }
  0x1e   :  { %214 = vmatpush.msrb.mxu2 %v128_v51  ;;  %234 = vmatpush.msrb.mxu3 %v129_v52  ;;  %v283_v26 = vld [vmem:[%s911_s6 + $0xb0] sm:$0xff]  ;;  %v266_v27 = vld [vmem:[%s911_s6 + $0x28] sm:$0xff]  ;;  %v265_v29 = vld [vmem:[%s911_s6 + $0x20] sm:$0xff] }
  0x1f   :  { %95 = vmatpush.msra.mxu0 %v57_v58  ;;  %115 = vmatpush.msra.mxu1 %v58_v59  ;;  %v282_v28 = vld [vmem:[%s911_s6 + $0xa8] sm:$0xff]  ;;  %v281_v30 = vld [vmem:[%s911_s6 + $0xa0] sm:$0xff]  ;;  %v264_v31 = vld [vmem:[%s911_s6 + $0x18] sm:$0xff] }
  0x20   :  { %215 = vmatpush.msrb.mxu2 %v126_v56  ;;  %235 = vmatpush.msrb.mxu3 %v127_v57  ;;  %v280_v32 = vld [vmem:[%s911_s6 + $0x98] sm:$0xff]  ;;  %v263_v33 = vld [vmem:[%s911_s6 + $0x10] sm:$0xff]  ;;  %v262_v35 = vld [vmem:[%s911_s6 + $0x8] sm:$0xff] }
  0x21   :  { %96 = vmatpush.msra.mxu0 %v55_v0  ;;  %116 = vmatpush.msra.mxu1 %v56_v1  ;;  %v279_v34 = vld [vmem:[%s911_s6 + $0x90] sm:$0xff]  ;;  %v278_v36 = vld [vmem:[%s911_s6 + $0x88] sm:$0xff]  ;;  %v261_v37 = vld [vmem:[%s911_s6] sm:$0xff] }
  0x22   :  { %216 = vmatpush.msrb.mxu2 %v124_v61  ;;  %236 = vmatpush.msrb.mxu3 %v125_v62  ;;  %v277_v38 = vld [vmem:[%s911_s6 + $0x80] sm:$0xff]  ;;  %v366_v41 = vld [vmem:[%s912_s7 + $0x78] sm:$0xff]  ;;  %v365_v42 = vld [vmem:[%s912_s7 + $0x70] sm:$0xff] }
  0x23   :  { %217 = vmatmul.f32.vlgmr.msrb.gmra.mxu2 %v123_v63  ;;  %237 = vmatmul.f32.vlgmr.msrb.gmra.mxu3 %v123_v63  ;;  %v350_v43 = vld [vmem:[%s913_s8 + $0x78] sm:$0xff]  ;;  %v349_v44 = vld [vmem:[%s913_s8 + $0x70] sm:$0xff]  ;;  %v364_v45 = vld [vmem:[%s912_s7 + $0x68] sm:$0xff] }
  0x24   :  { %48 = vadd.xlane.f32.xlu0 %v47_v2  ;;  %97 = vmatpush.msra.mxu0 %v53_v3  ;;  %v348_v46 = vld [vmem:[%s913_s8 + $0x68] sm:$0xff]  ;;  %v363_v48 = vld [vmem:[%s912_s7 + $0x60] sm:$0xff]  ;;  %v362_v52 = vld [vmem:[%s912_s7 + $0x58] sm:$0xff] }
  0x25   :  { %117 = vmatpush.msra.mxu1 %v54_v4  ;;  %367 = vmatpush.msra.mxu2 %v366_v41  ;;  %v347_v49 = vld [vmem:[%s913_s8 + $0x60] sm:$0xff]  ;;  %v361_v56 = vld [vmem:[%s912_s7 + $0x50] sm:$0xff]  ;;  %v360_v62 = vld [vmem:[%s912_s7 + $0x48] sm:$0xff] }
  0x26   :  { %98 = vmatpush.msra.mxu0 %v51_v5  ;;  %387 = vmatpush.msra.mxu3 %v350_v43  ;;  %v241_v50 = vld [vmem:[%s914_s5] sm:$0x3]  ;;  %v345_v57 = vld [vmem:[%s913_s8 + $0x50] sm:$0xff]  ;;  %v344_v63 = vld [vmem:[%s913_s8 + $0x48] sm:$0xff] }
  0x27   :  { %118 = vmatpush.msra.mxu1 %v52_v6  ;;  %99 = vmatmul.f32.vlgmr.msra.gmra.mxu0 %v41_v53  ;;  %v243_v54 = vperm.slane %v241_v50, 0  ;;  %v244_v55 = vperm.slane %v241_v50, 1  ;;  %v359_v4 = vld [vmem:[%s912_s7 + $0x40] sm:$0xff] }
  0x28   :  { %119 = vmatmul.f32.vlgmr.msra.gmra.mxu1 %v41_v53  ;;  %293 = vmatpush.msrb.mxu0 %v276_v7  ;;  %v346_v53 = vld [vmem:[%s913_s8 + $0x58] sm:$0xff]  ;;  %v343_v5 = vld [vmem:[%s913_s8 + $0x40] sm:$0xff] }
  0x29   :  { %313 = vmatpush.msrb.mxu1 %v292_v8  ;;  %368 = vmatpush.msra.mxu2 %v365_v42  ;;  %v358_v8 = vld [vmem:[%s912_s7 + $0x38] sm:$0xff] }
  0x2a   :  { %294 = vmatpush.msrb.mxu0 %v275_v9  ;;  %388 = vmatpush.msra.mxu3 %v349_v44  ;;  %v342_v9 = vld [vmem:[%s913_s8 + $0x38] sm:$0xff] }
  0x2b   :  { %314 = vmatpush.msrb.mxu1 %v291_v10  ;;  %369 = vmatpush.msra.mxu2 %v364_v45 }
  0x2c   :  { %295 = vmatpush.msrb.mxu0 %v274_v11  ;;  %389 = vmatpush.msra.mxu3 %v348_v46 }
  0x2d   :  { %315 = vmatpush.msrb.mxu1 %v290_v12  ;;  %370 = vmatpush.msra.mxu2 %v363_v48  ;;  %v357_v12 = vld [vmem:[%s912_s7 + $0x30] sm:$0xff] }
  0x2e   :  { %296 = vmatpush.msrb.mxu0 %v273_v13  ;;  %390 = vmatpush.msra.mxu3 %v347_v49  ;;  %v341_v13 = vld [vmem:[%s913_s8 + $0x30] sm:$0xff] }
  0x2f   :  { %316 = vmatpush.msrb.mxu1 %v289_v14  ;;  %371 = vmatpush.msra.mxu2 %v362_v52 }
  0x30   :  { %297 = vmatpush.msrb.mxu0 %v272_v15  ;;  %391 = vmatpush.msra.mxu3 %v346_v53 }
  0x31   :  { %317 = vmatpush.msrb.mxu1 %v288_v16  ;;  %372 = vmatpush.msra.mxu2 %v361_v56  ;;  %v356_v16 = vld [vmem:[%s912_s7 + $0x28] sm:$0xff] }
  0x32   :  { %298 = vmatpush.msrb.mxu0 %v271_v17  ;;  %392 = vmatpush.msra.mxu3 %v345_v57  ;;  %v340_v17 = vld [vmem:[%s913_s8 + $0x28] sm:$0xff] }
  0x33   :  { %318 = vmatpush.msrb.mxu1 %v287_v18  ;;  %373 = vmatpush.msra.mxu2 %v360_v62 }
  0x34   :  { %299 = vmatpush.msrb.mxu0 %v270_v19  ;;  %393 = vmatpush.msra.mxu3 %v344_v63 }
  0x35   :  { %319 = vmatpush.msrb.mxu1 %v286_v20  ;;  %374 = vmatpush.msra.mxu2 %v359_v4  ;;  %v355_v20 = vld [vmem:[%s912_s7 + $0x20] sm:$0xff] }
  0x36   :  { %300 = vmatpush.msrb.mxu0 %v269_v21  ;;  %394 = vmatpush.msra.mxu3 %v343_v5  ;;  %v339_v21 = vld [vmem:[%s913_s8 + $0x20] sm:$0xff] }
  0x37   :  { %320 = vmatpush.msrb.mxu1 %v285_v22  ;;  %375 = vmatpush.msra.mxu2 %v358_v8 }
  0x38   :  { %301 = vmatpush.msrb.mxu0 %v268_v23  ;;  %395 = vmatpush.msra.mxu3 %v342_v9 }
  0x39   :  { %321 = vmatpush.msrb.mxu1 %v284_v24  ;;  %376 = vmatpush.msra.mxu2 %v357_v12  ;;  %v354_v24 = vld [vmem:[%s912_s7 + $0x18] sm:$0xff] }
  0x3a   :  { %302 = vmatpush.msrb.mxu0 %v267_v25  ;;  %396 = vmatpush.msra.mxu3 %v341_v13  ;;  %v338_v25 = vld [vmem:[%s913_s8 + $0x18] sm:$0xff] }
  0x3b   :  { %322 = vmatpush.msrb.mxu1 %v283_v26  ;;  %377 = vmatpush.msra.mxu2 %v356_v16  ;;  %v353_v26 = vld [vmem:[%s912_s7 + $0x10] sm:$0xff] }
  0x3c   :  { %303 = vmatpush.msrb.mxu0 %v266_v27  ;;  %397 = vmatpush.msra.mxu3 %v340_v17 }
  0x3d   :  { %323 = vmatpush.msrb.mxu1 %v282_v28  ;;  %378 = vmatpush.msra.mxu2 %v355_v20 }
  0x3e   :  { %304 = vmatpush.msrb.mxu0 %v265_v29  ;;  %398 = vmatpush.msra.mxu3 %v339_v21  ;;  %v352_v29 = vld [vmem:[%s912_s7 + $0x8] sm:$0xff] }
  0x3f   :  { %324 = vmatpush.msrb.mxu1 %v281_v30  ;;  %379 = vmatpush.msra.mxu2 %v354_v24  ;;  %v337_v30 = vld [vmem:[%s913_s8 + $0x10] sm:$0xff] }
  0x40   :  { %305 = vmatpush.msrb.mxu0 %v264_v31  ;;  %399 = vmatpush.msra.mxu3 %v338_v25  ;;  %v351_v31 = vld [vmem:[%s912_s7] sm:$0xff] }
  0x41   :  { %325 = vmatpush.msrb.mxu1 %v280_v32  ;;  %380 = vmatpush.msra.mxu2 %v353_v26  ;;  %v336_v32 = vld [vmem:[%s913_s8 + $0x8] sm:$0xff] }
  0x42   :  { %306 = vmatpush.msrb.mxu0 %v263_v33  ;;  %400 = vmatpush.msra.mxu3 %v337_v30  ;;  %v335_v33 = vld [vmem:[%s913_s8] sm:$0xff] }
  0x43   :  { %326 = vmatpush.msrb.mxu1 %v279_v34  ;;  %381 = vmatpush.msra.mxu2 %v352_v29 }
  0x44   :  { %307 = vmatpush.msrb.mxu0 %v262_v35  ;;  %401 = vmatpush.msra.mxu3 %v336_v32 }
  0x45   :  { %327 = vmatpush.msrb.mxu1 %v278_v36  ;;  %382 = vmatpush.msra.mxu2 %v351_v31 }
  0x46   :  { %308 = vmatpush.msrb.mxu0 %v261_v37  ;;  %402 = vmatpush.msra.mxu3 %v335_v33 }
  0x47   :  { %328 = vmatpush.msrb.mxu1 %v277_v38  ;;  %v428_v38 = vld [vmem:[%s916_s9] ss:$0 sm:$0xff] }
  0x96   :  { %v178_v39 = vpop.f32.mrf.mxu2  ;;  %v198_v40 = vpop.f32.mrf.mxu3 }
  0x97   :  { %v49_v47 = vpop.xlane.xlu0 %48 }
  0x98   :  { %v50_v51 = vmul.f32 0.7, %v49_v47 }
  0xa4   :  { %v100_v0 = vpop.f32.mrf.mxu0 }
  0xa5   :  { %v120_v1 = vpop.f32.mrf.mxu1 }
  0xa6   :  { %v218_v58 = vpop.f32.mrf.mxu2  ;;  %v238_v59 = vpop.f32.mrf.mxu3 }
  0xa7   :  { %v219_v60 = vadd.f32 %v218_v58, %v50_v51  ;;  %v239_v61 = vadd.f32 %v238_v59, %v50_v51 }
  0xa9   :  { %v247_v2 = vadd.f32 %v243_v54, %v219_v60  ;;  %v248_v3 = vadd.f32 %v244_v55, %v239_v61 }
  0xab   :  { %v249_v6 = vadd.f32 %v247_v2, %v100_v0  ;;  %v250_v7 = vadd.f32 %v248_v3, %v120_v1 }
  0xad   :  { %v251_v10 = vadd.f32 %v249_v6, %v178_v39  ;;  %v252_v11 = vadd.f32 %v250_v7, %v198_v40 }
  0xaf   :  { %v253_v14 = vmax.f32 %v251_v10, 0.0  ;;  %v254_v15 = vmax.f32 %v252_v11, 0.0 }
  0xb1   :  { %v255_v18 = vsub.f32 0.0, %v253_v14  ;;  %v256_v19 = vsub.f32 0.0, %v254_v15 }
  0xb3   :  { %v257_v22 = vmul.f32 1.442695, %v255_v18  ;;  %v259_v23 = vmul.f32 1.442695, %v256_v19 }
  0xb5   :  { %429 = vpow2.f32 %v257_v22 }
  0xb6   :  { %431 = vpow2.f32 %v259_v23 }
  0xbb   :  { %v430_v27 = vpop.eup %429 }
  0xbc   :  { %v432_v28 = vpop.eup %431  ;;  %309 = vmatmul.f32.vlgmr.msrb.gmra.mxu0 %v430_v27 }
  0xbd   :  { %329 = vmatmul.f32.vlgmr.msrb.gmra.mxu1 %v432_v28 }
 0x139   :  { %v310_v34 = vpop.f32.mrf.mxu0 }
 0x13a   :  { %v330_v35 = vpop.f32.mrf.mxu1 }
 0x13b   :  { %v331_v36 = vadd.f32 %v330_v35, %v310_v34 }
 0x13d   :  { %333 = vst [vmem:[%s915_s11] sm:$0xff] %v331_v36  ;;  %v334_v37 = vmul.f32 %v331_v36, %v331_v36  ;;  %383 = vmatmul.f32.vlgmr.msra.gmra.mxu2 %v331_v36 }
 0x13f   :  { %403 = vmatmul.f32.vlgmr.msra.gmra.mxu3 %v334_v37 }
 0x1c0   :  { %v384_v39 = vpop.f32.mrf.mxu2 }
 0x1c2   :  { %v404_v40 = vpop.f32.mrf.mxu3 }
 0x1c3   :  { %v405_v41 = vadd.f32 %v404_v40, %v384_v39 }
 0x1c5   :  { %v411_v42 = vadd.f32 %v428_v38, %v405_v41 }
 0x1c7   :  { %v412_v43 = vmax.f32 %v411_v42, 0.0 }
 0x1c9   :  { %v413_v44 = vsub.f32 0.0, %v412_v43 }
 0x1cb   :  { %v414_v45 = vmul.f32 1.442695, %v413_v44 }
 0x1cd   :  { %433 = vpow2.f32 %v414_v45 }
 0x1d3   :  { %v434_v46 = vpop.eup %433 }
 0x1d4   :  { %416 = vst [vmem:[%s917_s10] sm:$0xff] %v434_v46 }

</bundles_post_ra>
